<compile_context>
chip_gen: v6e
topology: v6e:2x2x1
jax: 0.10.0
libtpu: 0.0.40
codegen_flags: <defaults>
</compile_context>

<pallas_src>
import jax
import jax.numpy as jnp
from jax import lax
from jax.experimental import pallas as pl
from jax.experimental.pallas import tpu as pltpu


def _round_up(x, m):
    return ((x + m - 1) // m) * m


def _classifier_matmul_kernel(x_ref, w_ref, o_ref):
    # x_ref: [tm, K]  bf16 feature tile
    # w_ref: [tn, K]  bf16 weight tile in PyTorch [class, in_dim] layout
    # o_ref: [tm, tn] f32 logits tile
    # Contract over K (dim 1 of both); MXU handles the transposed-RHS
    # orientation on-chip -> no HBM-side transpose of the weight.
    o_ref[...] = lax.dot_general(
        x_ref[...],
        w_ref[...],
        dimension_numbers=(((1,), (1,)), ((), ())),
        preferred_element_type=jnp.float32,
    ).astype(o_ref.dtype)


def classifier_without_bias_forward(x, weight, training=True):
    """Forward pass of Classifier_without_bias.

    Args:
      x:      [B, in_dim] features.
      weight: [class_num, in_dim] linear weight (PyTorch layout, no bias).
      training: if False, mirror the PyTorch module and skip the classifier.

    Returns:
      (feature, cls_score) with feature == x and
      cls_score == x @ weight.T (or None when not training).
    """
    feature = x
    if not training:
        return feature, None

    B, in_dim = x.shape
    class_num, in_dim_w = weight.shape
    assert in_dim == in_dim_w

    # bf16 matmul inputs, f32 accumulate/output.
    x_bf = x.astype(jnp.bfloat16)
    w_bf = weight.astype(jnp.bfloat16)

    # Tile sizes: lane-dense output (tn multiple of 128), 16-row-aligned M
    # (bf16 sublane packing).  Keep K whole (no reduction grid axis).
    tm = min(128, _round_up(B, 16))
    n128 = _round_up(class_num, 128)
    tn = min(512, n128)
    # Shrink tn for very large in_dim so the double-buffered bf16 weight tile
    # stays comfortably inside VMEM (v7x physical VMEM is 64 MiB).
    while tn > 128 and 2 * tn * in_dim * 2 > (16 << 20):
        tn //= 2

    B_pad = _round_up(B, tm)
    N_pad = _round_up(n128, tn)

    if B_pad != B:
        x_bf = jnp.pad(x_bf, ((0, B_pad - B), (0, 0)))
    if N_pad != class_num:
        # Zero rows -> padded classes produce exactly-zero logits (sliced off).
        w_bf = jnp.pad(w_bf, ((0, N_pad - class_num), (0, 0)))

    # Grid order (N, M): M is minor, so the weight tile is DMA'd once per j
    # and reused across all batch tiles (the op is weight-bandwidth-bound).
    grid = (N_pad // tn, B_pad // tm)

    # Double-buffered tile footprint (+ headroom), clamped to a safe range for
    # v5e (16 MiB scoped default) .. v7x (64 MiB physical).
    per_step = 2 * in_dim * (tm + tn) * 2 + 2 * tm * tn * 4
    vmem_bytes = int(min(max(per_step + (4 << 20), 16 << 20), 48 << 20))

    flops = 2 * B_pad * in_dim * N_pad
    bytes_accessed = B_pad * in_dim * 2 + N_pad * in_dim * 2 + B_pad * N_pad * 4

    cls_padded = pl.pallas_call(
        _classifier_matmul_kernel,
        out_shape=jax.ShapeDtypeStruct((B_pad, N_pad), jnp.float32),
        grid_spec=pltpu.PrefetchScalarGridSpec(
            num_scalar_prefetch=0,
            grid=grid,
            in_specs=[
                pl.BlockSpec((tm, in_dim), lambda j, i: (i, 0)),
                pl.BlockSpec((tn, in_dim), lambda j, i: (j, 0)),
            ],
            out_specs=pl.BlockSpec((tm, tn), lambda j, i: (i, j)),
        ),
        compiler_params=pltpu.CompilerParams(
            dimension_semantics=("parallel", "parallel"),
            vmem_limit_bytes=vmem_bytes,
        ),
        cost_estimate=pl.CostEstimate(
            flops=flops, transcendentals=0, bytes_accessed=bytes_accessed
        ),
    )(x_bf, w_bf)

    cls_score = cls_padded[:B, :class_num]
    return feature, cls_score


def init_classifier_without_bias_params(key, in_dim, class_num):
    """weights_init_classifier: nn.init.normal_(weight, std=0.001), no bias."""
    weight = 0.001 * jax.random.normal(key, (class_num, in_dim), dtype=jnp.float32)
    return weight


if __name__ == "__main__":
    key = jax.random.PRNGKey(0)

    # --- small test (exercises single-tile grid with padding) ---
    in_dim, class_num, batch = 32, 16, 4
    k_w, k_x, key = jax.random.split(key, 3)
    weight = init_classifier_without_bias_params(k_w, in_dim, class_num)
    x = jax.random.normal(k_x, (batch, in_dim), dtype=jnp.float32)

    feature, cls_score = classifier_without_bias_forward(x, weight, training=True)
    feature = jax.block_until_ready(feature)
    cls_score = jax.block_until_ready(cls_score)

    assert feature.shape == (batch, in_dim)
    assert cls_score.shape == (batch, class_num)
    assert jnp.array_equal(feature, x)

    # bf16-consistent reference (tight) and f32 reference (loose, bf16 rounding).
    ref_bf16 = jnp.dot(
        x.astype(jnp.bfloat16),
        weight.astype(jnp.bfloat16).T,
        preferred_element_type=jnp.float32,
    )
    ref_f32 = x @ weight.T
    assert jnp.allclose(cls_score, ref_bf16, atol=1e-5, rtol=1e-3)
    assert jnp.allclose(cls_score, ref_f32, atol=1e-3, rtol=2e-2)

    # eval mode: identity + None, matching the PyTorch module.
    feat_eval, score_eval = classifier_without_bias_forward(x, weight, training=False)
    assert score_eval is None and jnp.array_equal(feat_eval, x)

    # --- ragged, multi-tile test (exercises padding + (N, M) grid) ---
    in_dim2, class_num2, batch2 = 256, 751, 64
    k_w2, k_x2, key = jax.random.split(key, 3)
    weight2 = init_classifier_without_bias_params(k_w2, in_dim2, class_num2)
    x2 = jax.random.normal(k_x2, (batch2, in_dim2), dtype=jnp.float32)

    _, cls_score2 = classifier_without_bias_forward(x2, weight2, training=True)
    cls_score2 = jax.block_until_ready(cls_score2)
    assert cls_score2.shape == (batch2, class_num2)
    ref2 = jnp.dot(
        x2.astype(jnp.bfloat16),
        weight2.astype(jnp.bfloat16).T,
        preferred_element_type=jnp.float32,
    )
    assert jnp.allclose(cls_score2, ref2, atol=1e-5, rtol=1e-3)

    # --- multi-M-tile test (batch > 128 -> weight reused across batch tiles) ---
    in_dim3, class_num3, batch3 = 128, 200, 160
    k_w3, k_x3, key = jax.random.split(key, 3)
    weight3 = init_classifier_without_bias_params(k_w3, in_dim3, class_num3)
    x3 = jax.random.normal(k_x3, (batch3, in_dim3), dtype=jnp.float32)

    _, cls_score3 = classifier_without_bias_forward(x3, weight3, training=True)
    cls_score3 = jax.block_until_ready(cls_score3)
    assert cls_score3.shape == (batch3, class_num3)
    ref3 = jnp.dot(
        x3.astype(jnp.bfloat16),
        weight3.astype(jnp.bfloat16).T,
        preferred_element_type=jnp.float32,
    )
    assert jnp.allclose(cls_score3, ref3, atol=1e-5, rtol=1e-3)

    print("KERNEL_OK")
</pallas_src>

<mosaic_0001>
module attributes {stable_mosaic.version = 11 : i64} {
  func.func @_classifier_matmul_kernel(%arg0: i32, %arg1: i32, %arg2: memref<16x32xbf16, #tpu.memory_space<vmem>>, %arg3: memref<128x32xbf16, #tpu.memory_space<vmem>>, %arg4: memref<16x128xf32, #tpu.memory_space<vmem>>) attributes {dimension_semantics = [#tpu.dimension_semantics<parallel>, #tpu.dimension_semantics<parallel>], iteration_bounds = array<i64: 1, 1>, scalar_prefetch = 0 : i64, scratch_operands = 0 : i64, tpu.core_type = #tpu.core_type<tc>, window_params = [{transform_indices = @transform_0, window_bounds = array<i64: 16, 32>}, {transform_indices = @transform_1, window_bounds = array<i64: 128, 32>}, {transform_indices = @transform_2, window_bounds = array<i64: 16, 128>}]} {
    %c0 = arith.constant 0 : index
    %c0_0 = arith.constant 0 : index
    %0 = vector.load %arg2[%c0, %c0_0] : memref<16x32xbf16, #tpu.memory_space<vmem>>, vector<16x32xbf16>
    %c0_1 = arith.constant 0 : index
    %c0_2 = arith.constant 0 : index
    %1 = vector.load %arg3[%c0_1, %c0_2] : memref<128x32xbf16, #tpu.memory_space<vmem>>, vector<128x32xbf16>
    %cst = arith.constant dense<0.000000e+00> : vector<16x128xf32>
    %2 = tpu.matmul %0, %1, %cst {dimension_numbers = #tpu.dot_dimension_numbers<[1], [1], [0], [0], [0, 0, 1, 0], [], []>} : vector<16x32xbf16>, vector<128x32xbf16>, vector<16x128xf32> -> vector<16x128xf32>
    %c0_3 = arith.constant 0 : index
    %c0_4 = arith.constant 0 : index
    %3 = vector.load %arg4[%c0_3, %c0_4] : memref<16x128xf32, #tpu.memory_space<vmem>>, vector<16x128xf32>
    tpu.vector_store %arg4[%c0_3, %c0_4], %2 {strides = array<i32>} : memref<16x128xf32, #tpu.memory_space<vmem>>, vector<16x128xf32>,
    return
  }
  func.func @transform_0(%arg0: i32, %arg1: i32) -> (i32, i32) {
    %c0_i32 = arith.constant 0 : i32
    %c0_i32_0 = arith.constant 0 : i32
    return %arg1, %c0_i32 : i32, i32
  }
  func.func @transform_1(%arg0: i32, %arg1: i32) -> (i32, i32) {
    %c0_i32 = arith.constant 0 : i32
    %c0_i32_0 = arith.constant 0 : i32
    return %arg0, %c0_i32 : i32, i32
  }
  func.func @transform_2(%arg0: i32, %arg1: i32) -> (i32, i32) {
    %c0_i32 = arith.constant 0 : i32
    return %arg1, %arg0 : i32, i32
  }
}

</mosaic_0001>

<bundles_post_ra>
// kernel: tpu_custom_call.1
= control target key start
LH: loop header
LB: loop body
LE: loop exit
PB: predicated region body
PF: predicated region fallthrough
CT: control target
= control target key end

     0   :  { %v238_v1 = vmov 0.0   ;;  %vm76_vm0 = vcmask 261120   ;;  %vm239_vm1 = vmmov 0   ;;  %s297_s0 = inlined_call_operand.vmem [shape: bf16[16,32], index: 0, kind: input, shape index: {}]   ;;  %s298_s1 = inlined_call_operand.vmem [shape: bf16[128,32], index: 1, kind: input, shape index: {}]   ;;  %s299_s2 = inlined_call_operand.hbm [shape: f32[16,128], index: 2, kind: output, shape index: {}]  }
   0x1   :  { %v207_v0 = vld [vmem:[%s298_s1 + $0x38] sm:$0xff]   ;;  %182 = vmatprep.subr.bf16.mxu0 %v238_v1  ;;  %v208_v3 = vld [vmem:[%s298_s1 + $0x30] sm:$0xff]   ;;  %198 = vmatprep.mubr.msk.bf16.mxu0 %vm239_vm1, %v238_v1 }
   0x2   :  { %v102_v2 = vsel %vm76_vm0, %v207_v0, 0  ;;  %v99_v4 = vsel %vm76_vm0, %v208_v3, 0 }
   0x3   :  { %183 = vmatpush3.bf16.xpose.msra.mxu0 %v102_v2 }
   0x4   :  { %184 = vmatprep.subr.bf16.mxu0 %v238_v1 }
   0x5   :  { %7 = vsyncpa [#allocation3], 0  ;;  %v209_v5 = vld [vmem:[%s298_s1 + $0x28] sm:$0xff]   ;;  %v210_v7 = vld [vmem:[%s298_s1 + $0x20] sm:$0xff]   ;;  %s240_s27 = smov [#allocation2]  }
   0x6   :  { %v96_v6 = vsel %vm76_vm0, %v209_v5, 0  ;;  %v93_v8 = vsel %vm76_vm0, %v210_v7, 0  ;;  %v211_v9 = vld [vmem:[%s298_s1 + $0x18] sm:$0xff]   ;;  %v212_v11 = vld [vmem:[%s298_s1 + $0x10] sm:$0xff]   ;;  %v213_v13 = vld [vmem:[%s298_s1 + $0x8] sm:$0xff]   ;;  %s152_s28 = sshll.u32 %s240_s27, 4  ;;  %s153_s28 = int_to_ptr.vmem [resolvable:$true] %s152_s28 }
   0x7   :  { %v90_v10 = vsel %vm76_vm0, %v211_v9, 0  ;;  %v87_v12 = vsel %vm76_vm0, %v212_v11, 0  ;;  %v84_v14 = vsel %vm76_vm0, %v213_v13, 0  ;;  %v214_v15 = vld [vmem:[%s298_s1] sm:$0xff]   ;;  %s216_s29 = scalar_lea.vmem %s153_s28, 256  ;;  %p221_p1 = scmp.lt.s32.totalorder %s153_s28, %s153_s28 }
   0x8   :  { %v81_v16 = vsel %vm76_vm0, %v214_v15, 0  ;;  %v215_v17 = vld [vmem:[%s297_s0] sm:$0xff]   ;;  %p217_p0 = scmp.ne.s32.totalorder %s153_s28, %s216_s29  ;;  %p222_p2 = scmp.lt.s32.totalorder %s216_s29, %s216_s29 }
   0xa   :  { %p223_p3 = por %p222_p2, %p221_p1 }
   0xb   :  { %185 = vmatpush3.bf16.xpose.msra.mxu0 %v99_v4 }
   0xc   :  { %186 = vmatprep.subr.bf16.mxu0 %v238_v1  ;;  %p224_p4 = pnand %p223_p3, %p217_p0 }
  0x13   :  { %187 = vmatpush3.bf16.xpose.msra.mxu0 %v96_v6 }
  0x14   :  { %188 = vmatprep.subr.bf16.mxu0 %v238_v1 }
  0x1b   :  { %189 = vmatpush3.bf16.xpose.msra.mxu0 %v93_v8 }
  0x1c   :  { %190 = vmatprep.subr.bf16.mxu0 %v238_v1 }
  0x23   :  { %191 = vmatpush3.bf16.xpose.msra.mxu0 %v90_v10 }
  0x24   :  { %192 = vmatprep.subr.bf16.mxu0 %v238_v1 }
  0x2b   :  { %193 = vmatpush3.bf16.xpose.msra.mxu0 %v87_v12 }
  0x2c   :  { %194 = vmatprep.subr.bf16.mxu0 %v238_v1 }
  0x33   :  { %195 = vmatpush3.bf16.xpose.msra.mxu0 %v84_v14 }
  0x34   :  { %196 = vmatprep.subr.bf16.mxu0 %v238_v1 }
  0x3b   :  { %197 = vmatpush3.bf16.xpose.msra.mxu0 %v81_v16 }
  0x42   :  { %199 = vmatmul.mubr.msk.bf16.vlgmr.msra.gmra.mxu0 %vm76_vm0, %v215_v17 }
 0x102   :  { %v138_v18 = vpop.f32.mrf.mxu0 }
 0x103   :  { %145 = vst [vmem:[#allocation2] sm:$0xff] %v138_v18 }
 0x104   :  { %v200_v19 = vpop.f32.mrf.mxu0 }
 0x106   :  { %v141_v20 = vpop.f32.mrf.mxu0 }
 0x107   :  { %146 = vst [vmem:[#allocation2 + $0x8] sm:$0xff] %v141_v20 }
 0x108   :  { %v201_v21 = vpop.f32.mrf.mxu0 }
 0x109   :  { %227 = shalt.err (!%p224_p4)
}
 0x10a   :  { %s241_s1 = smov 128   ;;  %s242_s0 = smov 8  }
 0x10b   :  { %158 = dma.vmem_to_hbm [thread:$0]  %s153_s28, 256, %s299_s2, [#allocation3], %s241_s1, %s241_s1, %s242_s0  }
 0x10c   :  { %236 = dma.done.wait [#allocation3], 256  }
 0x10d   :  { %237 = vsyncadd [#allocation3], 4294967040 }
 0x10e   :  { %162 = vsyncpa [#allocation3], 1 }

</bundles_post_ra>
